<compile_context>
chip_gen: v7x
topology: tpu7x:2x2x1
jax: 0.10.0
libtpu: 0.0.40
codegen_flags: <defaults>
</compile_context>

<pallas_src>
import jax
import jax.numpy as jnp
from jax.experimental import pallas as pl
from jax.experimental.pallas import tpu as pltpu

EPS = 1e-3


def _stats_kernel(x_ref, sumx_ref, gram_ref):
    # x_ref: (nb1, Cin, bs1); sumx_ref: (1, Cin, 1) f32; gram_ref: (1, Cin, Cin) f32
    @pl.when(pl.program_id(1) == 0)
    def _():
        sumx_ref[...] = jnp.zeros_like(sumx_ref)
        gram_ref[...] = jnp.zeros_like(gram_ref)

    nb, cin, _ = x_ref.shape
    s_acc = jnp.zeros((cin, 1), jnp.float32)
    g_acc = jnp.zeros((cin, cin), jnp.float32)
    for i in range(nb):                                       # static, nb <= 8
        x = x_ref[i].astype(jnp.float32)                      # (Cin, bs1)
        s_acc = s_acc + jnp.sum(x, axis=1, keepdims=True)     # per-channel sum
        g_acc = g_acc + jax.lax.dot_general(                  # X X^T  (Cin, Cin)
            x, x, dimension_numbers=(((1,), (1,)), ((), ())),
            preferred_element_type=jnp.float32)
    sumx_ref[0] += s_acc
    gram_ref[0] += g_acc


def _apply_kernel(x_ref, w_ref, b_ref, o_ref):
    # x_ref: (nb2, Cin, bs2); w_ref: (Cout, Cin) f32 (BN folded); b_ref: (Cout, 1)
    # o_ref: (nb2, Cout, bs2)
    w = w_ref[...]
    b = b_ref[...]
    for i in range(x_ref.shape[0]):                           # static, nb <= 8
        y = jnp.dot(w, x_ref[i], preferred_element_type=jnp.float32)
        o_ref[i] = (y + b).astype(o_ref.dtype)


def _largest_tile_dividing(s_pad, cap):
    """Largest multiple of 128 that divides s_pad and is <= cap."""
    cap = min(cap, s_pad)
    cap -= cap % 128
    for bs in range(cap, 127, -128):
        if s_pad % bs == 0:
            return bs
    return 128


def _choose_spatial_tiling(s):
    """Return (s_pad, bs1, bs2): lane padding + per-pass lane tile sizes."""
    s_pad = -(-s // 128) * 128                    # lane-dense output, no vst.msk
    bs2 = _largest_tile_dividing(s_pad, 16384)    # apply pass (HBM-write bound)
    if bs2 < min(1024, s_pad):
        # Degenerate divisor structure (e.g. S_pad = 128 * large prime): pad
        # further so a healthy tile divides evenly.
        bs2 = 8192
        s_pad = -(-s_pad // bs2) * bs2
    bs1 = _largest_tile_dividing(s_pad, 32768)    # stats pass reads only 16 ch
    return s_pad, bs1, bs2


def _largest_divisor_leq(n, cap):
    for d in range(max(1, min(n, cap)), 0, -1):
        if n % d == 0:
            return d
    return 1


@jax.jit
def conv2d_batchnorm(x_nchw, weight, gamma, beta):
    """x_nchw: (N, Cin, H, W); weight: (Cout, Cin) (torch (Cout,Cin,1,1) squeezed);
    gamma/beta: (Cout,). Returns (N, Cout, H, W) = BN_train(Conv1x1(x))."""
    N, Cin, H, W = x_nchw.shape
    Cout = weight.shape[0]
    S = H * W
    itemsize = x_nchw.dtype.itemsize

    x3 = x_nchw.reshape(N, Cin, S)                # contiguous reshape, no transpose
    s_pad, bs1, bs2 = _choose_spatial_tiling(S)
    if s_pad != S:
        # Zero pad: exact for stats (adds 0 to sum/Gram), sliced off from output.
        x3 = jnp.pad(x3, ((0, 0), (0, 0), (0, s_pad - S)))

    # Batch blocking so each grid step moves a healthy amount of HBM traffic.
    nb1 = _largest_divisor_leq(
        N, min(8, max(1, (2 << 20) // max(Cin * bs1 * itemsize, 1))))
    nb2 = _largest_divisor_leq(
        N, min(8, max(1, (1 << 20) // max(Cout * bs2 * itemsize, 1))))

    # ---- pass 1: per-channel sum and Gram matrix of X (f32), per-n partials so
    #      the N axis is megacore-shardable; S axis is the reduction ("arbitrary").
    grid1 = (N // nb1, s_pad // bs1)
    sumx_p, gram_p = pl.pallas_call(
        _stats_kernel,
        out_shape=(jax.ShapeDtypeStruct((grid1[0], Cin, 1), jnp.float32),
                   jax.ShapeDtypeStruct((grid1[0], Cin, Cin), jnp.float32)),
        grid_spec=pltpu.PrefetchScalarGridSpec(
            num_scalar_prefetch=0,
            grid=grid1,
            in_specs=[pl.BlockSpec((nb1, Cin, bs1), lambda n, s: (n, 0, s))],
            out_specs=(pl.BlockSpec((1, Cin, 1), lambda n, s: (n, 0, 0)),
                       pl.BlockSpec((1, Cin, Cin), lambda n, s: (n, 0, 0)))),
        compiler_params=pltpu.CompilerParams(
            dimension_semantics=("parallel", "arbitrary"),
            vmem_limit_bytes=32 * 1024 * 1024),
    )(x3)
    sumx = jnp.sum(sumx_p, axis=0)                # (Cin, 1)
    gram = jnp.sum(gram_p, axis=0)                # (Cin, Cin)

    # ---- tiny host-side algebra: fold BN (batch stats) into conv weight/bias ----
    m_total = jnp.float32(N * S)                  # true element count (pad is zero)
    w32 = weight.astype(jnp.float32)              # (Cout, Cin)
    mean = w32 @ (sumx[:, 0] / m_total)           # (Cout,)
    ey2 = jnp.einsum('oc,cd,od->o', w32, gram, w32) / m_total
    var = jnp.maximum(ey2 - mean * mean, 0.0)     # biased variance (torch BN norm)
    inv_std = jax.lax.rsqrt(var + EPS)
    scale = gamma.astype(jnp.float32) * inv_std   # (Cout,)
    w_fold = scale[:, None] * w32                 # (Cout, Cin)
    bias = (beta.astype(jnp.float32) - mean * scale).reshape(Cout, 1)

    # ---- pass 2: out = W_fold @ x + bias (natively NCHW, lane-dense on S) ----
    grid2 = (N // nb2, s_pad // bs2)
    cost = pl.CostEstimate(
        flops=2 * N * S * Cin * Cout,
        transcendentals=0,
        bytes_accessed=N * s_pad * (Cin + Cout) * itemsize + (Cout * Cin + Cout) * 4)
    out3 = pl.pallas_call(
        _apply_kernel,
        out_shape=jax.ShapeDtypeStruct((N, Cout, s_pad), x_nchw.dtype),
        grid_spec=pltpu.PrefetchScalarGridSpec(
            num_scalar_prefetch=0,
            grid=grid2,
            in_specs=[pl.BlockSpec((nb2, Cin, bs2), lambda n, s: (n, 0, s)),
                      pl.BlockSpec((Cout, Cin), lambda n, s: (0, 0)),
                      pl.BlockSpec((Cout, 1), lambda n, s: (0, 0))],
            out_specs=pl.BlockSpec((nb2, Cout, bs2), lambda n, s: (n, 0, s))),
        compiler_params=pltpu.CompilerParams(
            dimension_semantics=("parallel", "parallel"),
            vmem_limit_bytes=48 * 1024 * 1024),
        cost_estimate=cost,
    )(x3, w_fold, bias)

    if s_pad != S:
        out3 = out3[:, :, :S]
    # TODO(synk): running_mean/running_var momentum updates (BatchNorm2d training
    # side effects) are not produced; only the normalized forward output.
    return out3.reshape(N, Cout, H, W)


def _reference(x_nchw, weight, gamma, beta):
    xf = x_nchw.astype(jnp.float32)
    y = jnp.einsum('oc,nchw->nohw', weight.astype(jnp.float32), xf)
    mean = y.mean(axis=(0, 2, 3), keepdims=True)
    var = y.var(axis=(0, 2, 3), keepdims=True)   # biased, matches torch BN normalization
    g = gamma.reshape(1, -1, 1, 1).astype(jnp.float32)
    b = beta.reshape(1, -1, 1, 1).astype(jnp.float32)
    out = (y - mean) * jax.lax.rsqrt(var + EPS) * g + b
    return out.astype(x_nchw.dtype)


if __name__ == "__main__":
    key = jax.random.PRNGKey(0)
    kx, kw, kg, kb = jax.random.split(key, 4)

    # Module fixes Cin=16, Cout=96; keep spatial/batch small for the test.
    N, Cin, H, W = 2, 16, 16, 16
    Cout = 96

    x = jax.random.normal(kx, (N, Cin, H, W), dtype=jnp.float32)
    weight = jax.random.normal(kw, (Cout, Cin), dtype=jnp.float32) * 0.1
    gamma = 1.0 + 0.1 * jax.random.normal(kg, (Cout,), dtype=jnp.float32)
    beta = 0.1 * jax.random.normal(kb, (Cout,), dtype=jnp.float32)

    out = conv2d_batchnorm(x, weight, gamma, beta)
    out = jax.block_until_ready(out)

    ref = _reference(x, weight, gamma, beta)
    assert out.shape == (N, Cout, H, W), out.shape
    err = float(jnp.max(jnp.abs(out.astype(jnp.float32) - ref.astype(jnp.float32))))
    assert err < 1e-3, err

    print("KERNEL_OK")
</pallas_src>

<mosaic_0001>
module attributes {stable_mosaic.version = 11 : i64} {
  func.func @_stats_kernel(%arg0: i32, %arg1: i32, %arg2: memref<2x16x256xf32, #tpu.memory_space<vmem>>, %arg3: memref<1x16x1xf32, #tpu.memory_space<vmem>>, %arg4: memref<1x16x16xf32, #tpu.memory_space<vmem>>) attributes {dimension_semantics = [#tpu.dimension_semantics<parallel>, #tpu.dimension_semantics<arbitrary>], iteration_bounds = array<i64: 1, 1>, scalar_prefetch = 0 : i64, scratch_operands = 0 : i64, tpu.core_type = #tpu.core_type<tc>, window_params = [{transform_indices = @transform_0, window_bounds = array<i64: 2, 16, 256>}, {transform_indices = @transform_1, window_bounds = array<i64: 1, 16, 1>}, {transform_indices = @transform_2, window_bounds = array<i64: 1, 16, 16>}]} {
    %c0_i32 = arith.constant 0 : i32
    %0 = arith.cmpi eq, %arg1, %c0_i32 : i32
    %1 = arith.extui %0 : i1 to i32
    %c0_i32_0 = arith.constant 0 : i32
    %2 = arith.cmpi ne, %1, %c0_i32_0 : i32
    scf.if %2 {
      %cst_22 = arith.constant 0.000000e+00 : f32
      %31 = vector.broadcast %cst_22 : f32 to vector<1x16x1xf32>
      %c0_23 = arith.constant 0 : index
      %c0_24 = arith.constant 0 : index
      %c0_25 = arith.constant 0 : index
      %32 = vector.load %arg3[%c0_23, %c0_24, %c0_25] : memref<1x16x1xf32, #tpu.memory_space<vmem>>, vector<1x16x1xf32>
      tpu.vector_store %arg3[%c0_23, %c0_24, %c0_25], %31 {strides = array<i32>} : memref<1x16x1xf32, #tpu.memory_space<vmem>>, vector<1x16x1xf32>,
      %cst_26 = arith.constant 0.000000e+00 : f32
      %33 = vector.broadcast %cst_26 : f32 to vector<1x16x16xf32>
      %c0_27 = arith.constant 0 : index
      %c0_28 = arith.constant 0 : index
      %c0_29 = arith.constant 0 : index
      %34 = vector.load %arg4[%c0_27, %c0_28, %c0_29] : memref<1x16x16xf32, #tpu.memory_space<vmem>>, vector<1x16x16xf32>
      tpu.vector_store %arg4[%c0_27, %c0_28, %c0_29], %33 {strides = array<i32>} : memref<1x16x16xf32, #tpu.memory_space<vmem>>, vector<1x16x16xf32>,
    } else {
    }
    %cst = arith.constant 0.000000e+00 : f32
    %3 = vector.broadcast %cst : f32 to vector<16x1xf32>
    %cst_1 = arith.constant 0.000000e+00 : f32
    %4 = vector.broadcast %cst_1 : f32 to vector<16x16xf32>
    %c0 = arith.constant 0 : index
    %c0_2 = arith.constant 0 : index
    %c0_3 = arith.constant 0 : index
    %5 = vector.load %arg2[%c0, %c0_2, %c0_3] : memref<2x16x256xf32, #tpu.memory_space<vmem>>, vector<1x16x256xf32>
    %6 = vector.shape_cast %5 : vector<1x16x256xf32> to vector<16x256xf32>
    %cst_4 = arith.constant dense<0.000000e+00> : vector<16xf32>
    %7 = vector.multi_reduction <add>, %6, %cst_4 [1] : vector<16x256xf32> to vector<16xf32>
    %8 = vector.shape_cast %7 : vector<16xf32> to vector<16x1xf32>
    %9 = arith.addf %3, %8 : vector<16x1xf32>
    %cst_5 = arith.constant dense<0.000000e+00> : vector<16x16xf32>
    %10 = tpu.matmul %6, %6, %cst_5 {dimension_numbers = #tpu.dot_dimension_numbers<[1], [1], [0], [0], [0, 0, 1, 0], [], []>} : vector<16x256xf32>, vector<16x256xf32>, vector<16x16xf32> -> vector<16x16xf32>
    %11 = arith.addf %4, %10 : vector<16x16xf32>
    %c1 = arith.constant 1 : index
    %c0_6 = arith.constant 0 : index
    %c0_7 = arith.constant 0 : index
    %12 = vector.load %arg2[%c1, %c0_6, %c0_7] : memref<2x16x256xf32, #tpu.memory_space<vmem>>, vector<1x16x256xf32>
    %13 = vector.shape_cast %12 : vector<1x16x256xf32> to vector<16x256xf32>
    %cst_8 = arith.constant dense<0.000000e+00> : vector<16xf32>
    %14 = vector.multi_reduction <add>, %13, %cst_8 [1] : vector<16x256xf32> to vector<16xf32>
    %15 = vector.shape_cast %14 : vector<16xf32> to vector<16x1xf32>
    %16 = arith.addf %9, %15 : vector<16x1xf32>
    %cst_9 = arith.constant dense<0.000000e+00> : vector<16x16xf32>
    %17 = tpu.matmul %13, %13, %cst_9 {dimension_numbers = #tpu.dot_dimension_numbers<[1], [1], [0], [0], [0, 0, 1, 0], [], []>} : vector<16x256xf32>, vector<16x256xf32>, vector<16x16xf32> -> vector<16x16xf32>
    %18 = arith.addf %11, %17 : vector<16x16xf32>
    %c0_10 = arith.constant 0 : index
    %c0_11 = arith.constant 0 : index
    %c0_12 = arith.constant 0 : index
    %19 = vector.load %arg3[%c0_10, %c0_11, %c0_12] : memref<1x16x1xf32, #tpu.memory_space<vmem>>, vector<1x16x1xf32>
    %20 = vector.shape_cast %19 : vector<1x16x1xf32> to vector<16x1xf32>
    %21 = arith.addf %20, %16 : vector<16x1xf32>
    %c0_13 = arith.constant 0 : index
    %c0_14 = arith.constant 0 : index
    %c0_15 = arith.constant 0 : index
    %22 = vector.load %arg3[%c0_13, %c0_14, %c0_15] : memref<1x16x1xf32, #tpu.memory_space<vmem>>, vector<1x16x1xf32>
    %23 = vector.shape_cast %22 : vector<1x16x1xf32> to vector<16x1xf32>
    %24 = vector.shape_cast %21 : vector<16x1xf32> to vector<1x16x1xf32>
    tpu.vector_store %arg3[%c0_13, %c0_14, %c0_15], %24 {strides = array<i32>} : memref<1x16x1xf32, #tpu.memory_space<vmem>>, vector<1x16x1xf32>,
    %c0_16 = arith.constant 0 : index
    %c0_17 = arith.constant 0 : index
    %c0_18 = arith.constant 0 : index
    %25 = vector.load %arg4[%c0_16, %c0_17, %c0_18] : memref<1x16x16xf32, #tpu.memory_space<vmem>>, vector<1x16x16xf32>
    %26 = vector.shape_cast %25 : vector<1x16x16xf32> to vector<16x16xf32>
    %27 = arith.addf %26, %18 : vector<16x16xf32>
    %c0_19 = arith.constant 0 : index
    %c0_20 = arith.constant 0 : index
    %c0_21 = arith.constant 0 : index
    %28 = vector.load %arg4[%c0_19, %c0_20, %c0_21] : memref<1x16x16xf32, #tpu.memory_space<vmem>>, vector<1x16x16xf32>
    %29 = vector.shape_cast %28 : vector<1x16x16xf32> to vector<16x16xf32>
    %30 = vector.shape_cast %27 : vector<16x16xf32> to vector<1x16x16xf32>
    tpu.vector_store %arg4[%c0_19, %c0_20, %c0_21], %30 {strides = array<i32>} : memref<1x16x16xf32, #tpu.memory_space<vmem>>, vector<1x16x16xf32>,
    return
  }
  func.func @transform_0(%arg0: i32, %arg1: i32) -> (i32, i32, i32) {
    %c0_i32 = arith.constant 0 : i32
    %c0_i32_0 = arith.constant 0 : i32
    return %arg0, %c0_i32, %arg1 : i32, i32, i32
  }
  func.func @transform_1(%arg0: i32, %arg1: i32) -> (i32, i32, i32) {
    %c0_i32 = arith.constant 0 : i32
    %c0_i32_0 = arith.constant 0 : i32
    %c0_i32_1 = arith.constant 0 : i32
    return %arg0, %c0_i32, %c0_i32_0 : i32, i32, i32
  }
  func.func @transform_2(%arg0: i32, %arg1: i32) -> (i32, i32, i32) {
    %c0_i32 = arith.constant 0 : i32
    %c0_i32_0 = arith.constant 0 : i32
    %c0_i32_1 = arith.constant 0 : i32
    return %arg0, %c0_i32, %c0_i32_0 : i32, i32, i32
  }
}

module attributes {stable_mosaic.version = 11 : i64} {
  func.func @_apply_kernel(%arg0: i32, %arg1: i32, %arg2: memref<2x16x256xf32, #tpu.memory_space<vmem>>, %arg3: memref<96x16xf32, #tpu.memory_space<vmem>>, %arg4: memref<96x1xf32, #tpu.memory_space<vmem>>, %arg5: memref<2x96x256xf32, #tpu.memory_space<vmem>>) attributes {dimension_semantics = [#tpu.dimension_semantics<parallel>, #tpu.dimension_semantics<parallel>], iteration_bounds = array<i64: 1, 1>, scalar_prefetch = 0 : i64, scratch_operands = 0 : i64, tpu.core_type = #tpu.core_type<tc>, window_params = [{transform_indices = @transform_0, window_bounds = array<i64: 2, 16, 256>}, {pipeline_mode = #tpu.pipeline_mode<synchronous>, transform_indices = @transform_1, window_bounds = array<i64: 96, 16>}, {pipeline_mode = #tpu.pipeline_mode<synchronous>, transform_indices = @transform_2, window_bounds = array<i64: 96, 1>}, {transform_indices = @transform_3, window_bounds = array<i64: 2, 96, 256>}]} {
    %c0 = arith.constant 0 : index
    %c0_0 = arith.constant 0 : index
    %0 = vector.load %arg3[%c0, %c0_0] : memref<96x16xf32, #tpu.memory_space<vmem>>, vector<96x16xf32>
    %c0_1 = arith.constant 0 : index
    %c0_2 = arith.constant 0 : index
    %1 = vector.load %arg4[%c0_1, %c0_2] : memref<96x1xf32, #tpu.memory_space<vmem>>, vector<96x1xf32>
    %c0_3 = arith.constant 0 : index
    %c0_4 = arith.constant 0 : index
    %c0_5 = arith.constant 0 : index
    %2 = vector.load %arg2[%c0_3, %c0_4, %c0_5] : memref<2x16x256xf32, #tpu.memory_space<vmem>>, vector<1x16x256xf32>
    %3 = vector.shape_cast %2 : vector<1x16x256xf32> to vector<16x256xf32>
    %cst = arith.constant dense<0.000000e+00> : vector<96x256xf32>
    %4 = tpu.matmul %0, %3, %cst {dimension_numbers = #tpu.dot_dimension_numbers<[1], [0], [0], [1], [0, 0, 1, 1], [], []>} : vector<96x16xf32>, vector<16x256xf32>, vector<96x256xf32> -> vector<96x256xf32>
    %5 = vector.broadcast %1 : vector<96x1xf32> to vector<96x256xf32>
    %6 = arith.addf %4, %5 : vector<96x256xf32>
    %c0_6 = arith.constant 0 : index
    %c0_7 = arith.constant 0 : index
    %c0_8 = arith.constant 0 : index
    %7 = vector.load %arg5[%c0_6, %c0_7, %c0_8] : memref<2x96x256xf32, #tpu.memory_space<vmem>>, vector<1x96x256xf32>
    %8 = vector.shape_cast %7 : vector<1x96x256xf32> to vector<96x256xf32>
    %9 = vector.shape_cast %6 : vector<96x256xf32> to vector<1x96x256xf32>
    tpu.vector_store %arg5[%c0_6, %c0_7, %c0_8], %9 {strides = array<i32>} : memref<2x96x256xf32, #tpu.memory_space<vmem>>, vector<1x96x256xf32>,
    %c1 = arith.constant 1 : index
    %c0_9 = arith.constant 0 : index
    %c0_10 = arith.constant 0 : index
    %10 = vector.load %arg2[%c1, %c0_9, %c0_10] : memref<2x16x256xf32, #tpu.memory_space<vmem>>, vector<1x16x256xf32>
    %11 = vector.shape_cast %10 : vector<1x16x256xf32> to vector<16x256xf32>
    %cst_11 = arith.constant dense<0.000000e+00> : vector<96x256xf32>
    %12 = tpu.matmul %0, %11, %cst_11 {dimension_numbers = #tpu.dot_dimension_numbers<[1], [0], [0], [1], [0, 0, 1, 1], [], []>} : vector<96x16xf32>, vector<16x256xf32>, vector<96x256xf32> -> vector<96x256xf32>
    %13 = vector.broadcast %1 : vector<96x1xf32> to vector<96x256xf32>
    %14 = arith.addf %12, %13 : vector<96x256xf32>
    %c1_12 = arith.constant 1 : index
    %c0_13 = arith.constant 0 : index
    %c0_14 = arith.constant 0 : index
    %15 = vector.load %arg5[%c1_12, %c0_13, %c0_14] : memref<2x96x256xf32, #tpu.memory_space<vmem>>, vector<1x96x256xf32>
    %16 = vector.shape_cast %15 : vector<1x96x256xf32> to vector<96x256xf32>
    %17 = vector.shape_cast %14 : vector<96x256xf32> to vector<1x96x256xf32>
    tpu.vector_store %arg5[%c1_12, %c0_13, %c0_14], %17 {strides = array<i32>} : memref<2x96x256xf32, #tpu.memory_space<vmem>>, vector<1x96x256xf32>,
    return
  }
  func.func @transform_0(%arg0: i32, %arg1: i32) -> (i32, i32, i32) {
    %c0_i32 = arith.constant 0 : i32
    %c0_i32_0 = arith.constant 0 : i32
    return %arg0, %c0_i32, %arg1 : i32, i32, i32
  }
  func.func @transform_1(%arg0: i32, %arg1: i32) -> (i32, i32) {
    %c0_i32 = arith.constant 0 : i32
    %c0_i32_0 = arith.constant 0 : i32
    %c0_i32_1 = arith.constant 0 : i32
    return %c0_i32, %c0_i32_0 : i32, i32
  }
  func.func @transform_2(%arg0: i32, %arg1: i32) -> (i32, i32) {
    %c0_i32 = arith.constant 0 : i32
    %c0_i32_0 = arith.constant 0 : i32
    %c0_i32_1 = arith.constant 0 : i32
    return %c0_i32, %c0_i32_0 : i32, i32
  }
  func.func @transform_3(%arg0: i32, %arg1: i32) -> (i32, i32, i32) {
    %c0_i32 = arith.constant 0 : i32
    %c0_i32_0 = arith.constant 0 : i32
    return %arg0, %c0_i32, %arg1 : i32, i32, i32
  }
}

</mosaic_0001>

<bundles_post_ra>
// kernel: conv2d_batchnorm.2
= control target key start
LH: loop header
LB: loop body
LE: loop exit
PB: predicated region body
PF: predicated region fallthrough
CT: control target
= control target key end

     0   :  { %vm17_vm0 = vcmask 130048   ;;  %vm14_vm1 = vcmask 7168   ;;  %v230_v16 = vmov 0.0   ;;  %s314_s0 = inlined_call_operand.vmem [shape: f32[2,16,256], index: 0, kind: input, shape index: {}]   ;;  %s315_s2 = inlined_call_operand.vmem [shape: f32[1,16,16], index: 2, kind: output, shape index: {1}]   ;;  %s316_s1 = inlined_call_operand.vmem [shape: f32[1,16,1], index: 1, kind: output, shape index: {0}]  }
   0x1   :  { %v218_v0 = vld [vmem:[%s314_s0 + $0x28] sm:$0xff]  ;;  %v220_v1 = vld [vmem:[%s314_s0 + $0x38] sm:$0xff]  ;;  %v217_v5 = vld [vmem:[%s314_s0 + $0x20] sm:$0xff]  ;;  %18 = vst.msk [vmem:[%s315_s2] sm:$0xff] %vm17_vm0, %v230_v16 }
   0x2   :  { %v21_v2 = vld [vmem:[%s314_s0 + $0x8] sm:$0xff]  ;;  %v221_v3 = vpack.c.bf16 %v220_v1, %v218_v0  ;;  %v23_v4 = vld [vmem:[%s314_s0 + $0x18] sm:$0xff]  ;;  %v219_v6 = vld [vmem:[%s314_s0 + $0x30] sm:$0xff]  ;;  %109 = vmatprep.mubr.f32.mxu0 %v218_v0  ;;  %v37_v11 = vadd.f32 %v218_v0, %v217_v5  ;;  %19 = vst.msk [vmem:[%s315_s2 + $0x8] sm:$0xff] %vm17_vm0, %v230_v16 }
   0x3   :  { %184 = vmatprep.mubr.f32.mxu1 %v21_v2  ;;  %v225_v7 = vpack.c.bf16 %v23_v4, %v21_v2  ;;  %v223_v8 = vpack.c.bf16 %v219_v6, %v217_v5  ;;  %v20_v9 = vld [vmem:[%s314_s0] sm:$0xff]  ;;  %v22_v10 = vld [vmem:[%s314_s0 + $0x10] sm:$0xff]  ;;  %v40_v14 = vadd.f32 %v220_v1, %v219_v6  ;;  %15 = vst.msk [vmem:[%s316_s1] sm:$0xff] %vm14_vm1, %v230_v16  ;;  %16 = vst.msk [vmem:[%s316_s1 + $0x8] sm:$0xff] %vm14_vm1, %v230_v16 }
   0x4   :  { %222 = vmatprep.subr.bf16.mxu0 %v221_v3  ;;  %v227_v12 = vpack.c.bf16 %v22_v10, %v20_v9  ;;  %v24_v13 = vadd.f32 %v21_v2, %v20_v9  ;;  %38 = vadd.xlane.f32.xlu1 %v37_v11  ;;  %v27_v15 = vadd.f32 %v23_v4, %v22_v10 }
   0x5   :  { %226 = vmatprep.subr.bf16.mxu1 %v225_v7  ;;  %224 = vmatpush1.bf16.xpose.msra.mxu0 %v223_v8 }
   0x6   :  { %228 = vmatpush1.bf16.xpose.msra.mxu1 %v227_v12  ;;  %25 = vadd.xlane.f32.xlu0 %v24_v13 }
   0x8   :  { %41 = vadd.xlane.f32.xlu1 %v40_v14  ;;  %v202_v29 = vld [vmem:[%s315_s2] sm:$0xff] }
   0x9   :  { %v203_v36 = vld [vmem:[%s315_s2 + $0x8] sm:$0xff] }
   0xa   :  { %28 = vadd.xlane.f32.xlu0 %v27_v15  ;;  %v195_v18 = vld [vmem:[%s316_s1] sm:$0xff]  ;;  %v196_v23 = vld [vmem:[%s316_s1 + $0x8] sm:$0xff] }
   0xc   :  { %110 = vmatmul.mubr.f32.vlgmr.msra.gmra.mrb[0].mxu0 %v217_v5 }
   0xd   :  { %185 = vmatmul.mubr.f32.vlgmr.msra.gmra.mrb[0].mxu1 %v20_v9  ;;  %114 = vmatprep.mubr.f32.mxu0 %v220_v1 }
   0xe   :  { %189 = vmatprep.mubr.f32.mxu1 %v23_v4 }
  0x10   :  { %115 = vmatmul.mubr.f32.gmra.mrb[2].mxu0 %v219_v6 }
  0x11   :  { %190 = vmatmul.mubr.f32.gmra.mrb[2].mxu1 %v22_v10 }
  0x91   :  { %v39_v17 = vpop.xlane.xlu1 %38 }
  0x93   :  { %v26_v19 = vpop.xlane.xlu0 %25 }
  0x94   :  { %v43_v20 = vadd.f32 %v39_v17, %v26_v19 }
  0x95   :  { %v42_v22 = vpop.xlane.xlu1 %41 }
  0x96   :  { %v197_v21 = vadd.f32 %v195_v18, %v43_v20 }
  0x97   :  { %v29_v24 = vpop.xlane.xlu0 %28 }
  0x98   :  { %200 = vst.msk [vmem:[%s316_s1] sm:$0xff] %vm14_vm1, %v197_v21  ;;  %v44_v25 = vadd.f32 %v42_v22, %v29_v24 }
  0x9a   :  { %v198_v26 = vadd.f32 %v196_v23, %v44_v25 }
  0x9c   :  { %201 = vst.msk [vmem:[%s316_s1 + $0x8] sm:$0xff] %vm14_vm1, %v198_v26 }
  0xdf   :  { %v111_v27 = vpop.f32.mrb[0].mxu0 }
  0xe0   :  { %v186_v28 = vpop.f32.mrb[0].mxu1  ;;  %v113_v30 = vpop.f32.mrb[1].mxu0 }
  0xe1   :  { %v187_v31 = vadd.f32 %v186_v28, %v111_v27  ;;  %v188_v32 = vpop.f32.mrb[1].mxu1 }
  0xe3   :  { %v204_v33 = vadd.f32 %v202_v29, %v187_v31  ;;  %v116_v34 = vpop.f32.mrb[2].mxu0 }
  0xe4   :  { %v191_v35 = vpop.f32.mrb[2].mxu1  ;;  %v118_v37 = vpop.f32.mrb[3].mxu0 }
  0xe5   :  { %207 = vst.msk [vmem:[%s315_s2] sm:$0xff] %vm17_vm0, %v204_v33  ;;  %v192_v38 = vadd.f32 %v191_v35, %v116_v34  ;;  %v193_v39 = vpop.f32.mrb[3].mxu1 }
  0xe7   :  { %v205_v40 = vadd.f32 %v203_v36, %v192_v38 }
  0xe9   :  { %208 = vst.msk [vmem:[%s315_s2 + $0x8] sm:$0xff] %vm17_vm0, %v205_v40 }

// kernel: conv2d_batchnorm.3
= control target key start
LH: loop header
LB: loop body
LE: loop exit
PB: predicated region body
PF: predicated region fallthrough
CT: control target
= control target key end

     0   :  { %v535_v3 = vmov 0.0   ;;  %v536_v8 = vmov 0   ;;  %vm102_vm0 = vcmask 130048   ;;  %s845_s0 = inlined_call_operand.vmem [shape: f32[2,16,256], index: 0, kind: input, shape index: {}]   ;;  %s846_s1 = inlined_call_operand.vmem [shape: f32[96,16], index: 1, kind: input, shape index: {}]   ;;  %s847_s2 = inlined_call_operand.vmem [shape: f32[96,1], index: 2, kind: input, shape index: {}]   ;;  %s848_s3 = inlined_call_operand.vmem [shape: f32[2,96,256], index: 3, kind: output, shape index: {}]  }
   0x1   :  { %v39_v0 = vld [vmem:[%s845_s0 + $0x8] sm:$0xff]  ;;  %v41_v1 = vld [vmem:[%s845_s0 + $0x18] sm:$0xff]  ;;  %203 = vmatprep.mubr.f32.mxu0 %v535_v3  ;;  %369 = vmatprep.mubr.f32.mxu1 %v535_v3  ;;  %v38_v6 = vld [vmem:[%s845_s0] sm:$0xff] }
   0x2   :  { %v484_v2 = vld [vmem:[%s845_s0 + $0x28] sm:$0xff]  ;;  %v523_v4 = vpack.c.bf16 %v41_v1, %v39_v0  ;;  %v486_v5 = vld [vmem:[%s845_s0 + $0x38] sm:$0xff]  ;;  %v40_v7 = vld [vmem:[%s845_s0 + $0x10] sm:$0xff]  ;;  %533 = vset.pattern.permute.xlu0 %v536_v8  ;;  %534 = vset.pattern.permute.xlu1 %v536_v8 }
   0x3   :  { %v527_v9 = vpack.c.bf16 %v486_v5, %v484_v2  ;;  %v525_v10 = vpack.c.bf16 %v40_v7, %v38_v6  ;;  %v483_v11 = vld [vmem:[%s845_s0 + $0x20] sm:$0xff]  ;;  %v485_v12 = vld [vmem:[%s845_s0 + $0x30] sm:$0xff]  ;;  %v15_v17 = vld [vmem:[%s846_s1 + $0x8] sm:$0xff] }
   0x4   :  { %524 = vmatprep.subr.bf16.mxu0 %v523_v4  ;;  %v529_v13 = vpack.c.bf16 %v485_v12, %v483_v11  ;;  %v14_v14 = vld [vmem:[%s846_s1] sm:$0xff]  ;;  %v28_v16 = vld [vmem:[%s847_s2 + $0x10] sm:$0xff]  ;;  %v27_v18 = vld [vmem:[%s847_s2 + $0x8] sm:$0xff] }
   0x5   :  { %528 = vmatprep.subr.bf16.mxu1 %v527_v9  ;;  %526 = vmatpush1.bf16.msra.mxu0 %v525_v10  ;;  %v26_v15 = vld [vmem:[%s847_s2] sm:$0xff]  ;;  %v29_v19 = vld [vmem:[%s847_s2 + $0x18] sm:$0xff]  ;;  %v16_v20 = vld [vmem:[%s846_s1 + $0x10] sm:$0xff] }
   0x6   :  { %530 = vmatpush1.bf16.msra.mxu1 %v529_v13  ;;  %44 = vperm.xlu0 %533, %v26_v15   ;;  %v30_v21 = vld [vmem:[%s847_s2 + $0x20] sm:$0xff]  ;;  %v31_v22 = vld [vmem:[%s847_s2 + $0x28] sm:$0xff]  ;;  %v17_v23 = vld [vmem:[%s846_s1 + $0x18] sm:$0xff] }
   0x7   :  { %54 = vperm.xlu1 %534, %v28_v16   ;;  %v32_v24 = vld [vmem:[%s847_s2 + $0x30] sm:$0xff]  ;;  %v33_v25 = vld [vmem:[%s847_s2 + $0x38] sm:$0xff]  ;;  %v18_v26 = vld [vmem:[%s846_s1 + $0x20] sm:$0xff] }
   0x8   :  { %471 = vmatmul.mubr.msk.f32.vlgmr.msra.gmra.mrb[0].mxu0 %vm102_vm0, %v14_v14  ;;  %v34_v27 = vld [vmem:[%s847_s2 + $0x40] sm:$0xff]  ;;  %v35_v28 = vld [vmem:[%s847_s2 + $0x48] sm:$0xff]  ;;  %v36_v30 = vld [vmem:[%s847_s2 + $0x50] sm:$0xff] }
   0x9   :  { %487 = vmatmul.mubr.msk.f32.vlgmr.msra.gmra.mrb[0].mxu1 %vm102_vm0, %v14_v14  ;;  %209 = vmatprep.mubr.f32.mxu0 %v535_v3  ;;  %v19_v29 = vld [vmem:[%s846_s1 + $0x28] sm:$0xff]  ;;  %v37_v31 = vld [vmem:[%s847_s2 + $0x58] sm:$0xff]  ;;  %v20_v32 = vld [vmem:[%s846_s1 + $0x30] sm:$0xff] }
   0xa   :  { %375 = vmatprep.mubr.f32.mxu1 %v535_v3  ;;  %49 = vperm.xlu0 %533, %v27_v18   ;;  %v21_v33 = vld [vmem:[%s846_s1 + $0x38] sm:$0xff]  ;;  %v22_v34 = vld [vmem:[%s846_s1 + $0x40] sm:$0xff]  ;;  %v23_v35 = vld [vmem:[%s846_s1 + $0x48] sm:$0xff] }
   0xb   :  { %59 = vperm.xlu1 %534, %v29_v19   ;;  %v24_v36 = vld [vmem:[%s846_s1 + $0x50] sm:$0xff]  ;;  %v25_v37 = vld [vmem:[%s846_s1 + $0x58] sm:$0xff] }
   0xc   :  { %472 = vmatmul.mubr.msk.f32.gmra.mrb[2].mxu0 %vm102_vm0, %v15_v17 }
   0xd   :  { %488 = vmatmul.mubr.msk.f32.gmra.mrb[2].mxu1 %vm102_vm0, %v15_v17  ;;  %215 = vmatprep.mubr.f32.mxu0 %v535_v3 }
   0xe   :  { %381 = vmatprep.mubr.f32.mxu1 %v535_v3  ;;  %64 = vperm.xlu0 %533, %v30_v21  }
   0xf   :  { %69 = vperm.xlu1 %534, %v31_v22  }
  0x10   :  { %473 = vmatmul.mubr.msk.f32.gmra.mrb[4].mxu0 %vm102_vm0, %v16_v20 }
  0x11   :  { %489 = vmatmul.mubr.msk.f32.gmra.mrb[4].mxu1 %vm102_vm0, %v16_v20  ;;  %221 = vmatprep.mubr.f32.mxu0 %v535_v3 }
  0x12   :  { %387 = vmatprep.mubr.f32.mxu1 %v535_v3  ;;  %74 = vperm.xlu0 %533, %v32_v24  }
  0x13   :  { %79 = vperm.xlu1 %534, %v33_v25  }
  0x14   :  { %474 = vmatmul.mubr.msk.f32.gmra.mrb[6].mxu0 %vm102_vm0, %v17_v23 }
  0x15   :  { %490 = vmatmul.mubr.msk.f32.gmra.mrb[6].mxu1 %vm102_vm0, %v17_v23  ;;  %227 = vmatprep.mubr.f32.mxu0 %v535_v3 }
  0x16   :  { %393 = vmatprep.mubr.f32.mxu1 %v535_v3  ;;  %84 = vperm.xlu0 %533, %v34_v27  }
  0x17   :  { %89 = vperm.xlu1 %534, %v35_v28  }
  0x18   :  { %475 = vmatmul.mubr.msk.f32.gmra.mrb[8].mxu0 %vm102_vm0, %v18_v26 }
  0x19   :  { %491 = vmatmul.mubr.msk.f32.gmra.mrb[8].mxu1 %vm102_vm0, %v18_v26  ;;  %233 = vmatprep.mubr.f32.mxu0 %v535_v3 }
  0x1a   :  { %399 = vmatprep.mubr.f32.mxu1 %v535_v3  ;;  %94 = vperm.xlu0 %533, %v36_v30  }
  0x1b   :  { %99 = vperm.xlu1 %534, %v37_v31  }
  0x1c   :  { %476 = vmatmul.mubr.msk.f32.gmra.mrb[10].mxu0 %vm102_vm0, %v19_v29 }
  0x1d   :  { %492 = vmatmul.mubr.msk.f32.gmra.mrb[10].mxu1 %vm102_vm0, %v19_v29  ;;  %239 = vmatprep.mubr.f32.mxu0 %v535_v3 }
  0x1e   :  { %405 = vmatprep.mubr.f32.mxu1 %v535_v3 }
  0x20   :  { %477 = vmatmul.mubr.msk.f32.gmra.mrb[12].mxu0 %vm102_vm0, %v20_v32 }
  0x21   :  { %493 = vmatmul.mubr.msk.f32.gmra.mrb[12].mxu1 %vm102_vm0, %v20_v32  ;;  %245 = vmatprep.mubr.f32.mxu0 %v535_v3 }
  0x22   :  { %411 = vmatprep.mubr.f32.mxu1 %v535_v3 }
  0x24   :  { %478 = vmatmul.mubr.msk.f32.gmra.mrb[14].mxu0 %vm102_vm0, %v21_v33 }
  0x25   :  { %494 = vmatmul.mubr.msk.f32.gmra.mrb[14].mxu1 %vm102_vm0, %v21_v33  ;;  %251 = vmatprep.mubr.f32.mxu0 %v535_v3 }
  0x26   :  { %417 = vmatprep.mubr.f32.mxu1 %v535_v3 }
  0x28   :  { %479 = vmatmul.mubr.msk.f32.gmra.mrb[16].mxu0 %vm102_vm0, %v22_v34 }
  0x29   :  { %495 = vmatmul.mubr.msk.f32.gmra.mrb[16].mxu1 %vm102_vm0, %v22_v34  ;;  %257 = vmatprep.mubr.f32.mxu0 %v535_v3 }
  0x2a   :  { %423 = vmatprep.mubr.f32.mxu1 %v535_v3 }
  0x2c   :  { %480 = vmatmul.mubr.msk.f32.gmra.mrb[18].mxu0 %vm102_vm0, %v23_v35 }
  0x2d   :  { %496 = vmatmul.mubr.msk.f32.gmra.mrb[18].mxu1 %vm102_vm0, %v23_v35  ;;  %263 = vmatprep.mubr.f32.mxu0 %v535_v3 }
  0x2e   :  { %429 = vmatprep.mubr.f32.mxu1 %v535_v3 }
  0x30   :  { %481 = vmatmul.mubr.msk.f32.gmra.mrb[20].mxu0 %vm102_vm0, %v24_v36 }
  0x31   :  { %497 = vmatmul.mubr.msk.f32.gmra.mrb[20].mxu1 %vm102_vm0, %v24_v36  ;;  %269 = vmatprep.mubr.f32.mxu0 %v535_v3 }
  0x32   :  { %435 = vmatprep.mubr.f32.mxu1 %v535_v3 }
  0x34   :  { %482 = vmatmul.mubr.msk.f32.gmra.mrb[22].mxu0 %vm102_vm0, %v25_v37 }
  0x35   :  { %498 = vmatmul.mubr.msk.f32.gmra.mrb[22].mxu1 %vm102_vm0, %v25_v37 }
  0x85   :  { %v45_v38 = vpop.permute.xlu0 %44 }
  0x86   :  { %v55_v53 = vpop.permute.xlu1 %54 }
  0x89   :  { %v50_v46 = vpop.permute.xlu0 %49 }
  0x8a   :  { %v60_v1 = vpop.permute.xlu1 %59 }
  0x8d   :  { %v65_v10 = vpop.permute.xlu0 %64 }
  0x8e   :  { %v70_v19 = vpop.permute.xlu1 %69 }
  0x91   :  { %v75_v28 = vpop.permute.xlu0 %74 }
  0x92   :  { %v80_v37 = vpop.permute.xlu1 %79 }
  0xdb   :  { %v205_v39 = vpop.f32.mrb[0].mxu0 }
  0xdc   :  { %v206_v40 = vadd.f32 %v205_v39, %v45_v38  ;;  %v371_v41 = vpop.f32.mrb[0].mxu1  ;;  %v207_v42 = vpop.f32.mrb[1].mxu0 }
  0xdd   :  { %v372_v43 = vadd.f32 %v371_v41, %v45_v38  ;;  %v208_v44 = vadd.f32 %v207_v42, %v45_v38  ;;  %v373_v45 = vpop.f32.mrb[1].mxu1 }
  0xde   :  { %276 = vst [vmem:[%s848_s3] sm:$0xff] %v206_v40  ;;  %v374_v47 = vadd.f32 %v373_v45, %v45_v38 }
  0xdf   :  { %499 = vst [vmem:[%s848_s3 + $0xc0] sm:$0xff] %v372_v43  ;;  %277 = vst [vmem:[%s848_s3 + $0x8] sm:$0xff] %v208_v44  ;;  %v211_v48 = vpop.f32.mrb[2].mxu0 }
  0xe0   :  { %500 = vst [vmem:[%s848_s3 + $0xc8] sm:$0xff] %v374_v47  ;;  %v212_v49 = vadd.f32 %v211_v48, %v50_v46  ;;  %v377_v50 = vpop.f32.mrb[2].mxu1  ;;  %v213_v51 = vpop.f32.mrb[3].mxu0 }
  0xe1   :  { %v378_v52 = vadd.f32 %v377_v50, %v50_v46  ;;  %v214_v54 = vadd.f32 %v213_v51, %v50_v46  ;;  %v379_v55 = vpop.f32.mrb[3].mxu1 }
  0xe2   :  { %278 = vst [vmem:[%s848_s3 + $0x10] sm:$0xff] %v212_v49  ;;  %v380_v56 = vadd.f32 %v379_v55, %v50_v46  ;;  %v85_v46 = vpop.permute.xlu0 %84  ;;  %v90_v55 = vpop.permute.xlu1 %89 }
  0xe3   :  { %501 = vst [vmem:[%s848_s3 + $0xd0] sm:$0xff] %v378_v52  ;;  %279 = vst [vmem:[%s848_s3 + $0x18] sm:$0xff] %v214_v54  ;;  %v217_v57 = vpop.f32.mrb[4].mxu0 }
  0xe4   :  { %502 = vst [vmem:[%s848_s3 + $0xd8] sm:$0xff] %v380_v56  ;;  %v218_v58 = vadd.f32 %v217_v57, %v55_v53  ;;  %v383_v59 = vpop.f32.mrb[4].mxu1  ;;  %v219_v60 = vpop.f32.mrb[5].mxu0 }
  0xe5   :  { %v384_v61 = vadd.f32 %v383_v59, %v55_v53  ;;  %v220_v62 = vadd.f32 %v219_v60, %v55_v53  ;;  %v385_v63 = vpop.f32.mrb[5].mxu1 }
  0xe6   :  { %280 = vst [vmem:[%s848_s3 + $0x20] sm:$0xff] %v218_v58  ;;  %v386_v0 = vadd.f32 %v385_v63, %v55_v53 }
  0xe7   :  { %503 = vst [vmem:[%s848_s3 + $0xe0] sm:$0xff] %v384_v61  ;;  %281 = vst [vmem:[%s848_s3 + $0x28] sm:$0xff] %v220_v62  ;;  %v223_v2 = vpop.f32.mrb[6].mxu0 }
  0xe8   :  { %504 = vst [vmem:[%s848_s3 + $0xe8] sm:$0xff] %v386_v0  ;;  %v224_v3 = vadd.f32 %v223_v2, %v60_v1  ;;  %v389_v4 = vpop.f32.mrb[6].mxu1  ;;  %v225_v5 = vpop.f32.mrb[7].mxu0 }
  0xe9   :  { %v390_v6 = vadd.f32 %v389_v4, %v60_v1  ;;  %v226_v7 = vadd.f32 %v225_v5, %v60_v1  ;;  %v391_v8 = vpop.f32.mrb[7].mxu1  ;;  %v95_v0 = vpop.permute.xlu0 %94 }
  0xea   :  { %282 = vst [vmem:[%s848_s3 + $0x30] sm:$0xff] %v224_v3  ;;  %v392_v9 = vadd.f32 %v391_v8, %v60_v1 }
  0xeb   :  { %505 = vst [vmem:[%s848_s3 + $0xf0] sm:$0xff] %v390_v6  ;;  %283 = vst [vmem:[%s848_s3 + $0x38] sm:$0xff] %v226_v7  ;;  %v229_v11 = vpop.f32.mrb[8].mxu0 }
  0xec   :  { %506 = vst [vmem:[%s848_s3 + $0xf8] sm:$0xff] %v392_v9  ;;  %v230_v12 = vadd.f32 %v229_v11, %v65_v10  ;;  %v395_v13 = vpop.f32.mrb[8].mxu1  ;;  %v231_v14 = vpop.f32.mrb[9].mxu0 }
  0xed   :  { %v396_v15 = vadd.f32 %v395_v13, %v65_v10  ;;  %v232_v16 = vadd.f32 %v231_v14, %v65_v10  ;;  %v397_v17 = vpop.f32.mrb[9].mxu1  ;;  %v100_v9 = vpop.permute.xlu1 %99 }
  0xee   :  { %284 = vst [vmem:[%s848_s3 + $0x40] sm:$0xff] %v230_v12  ;;  %v398_v18 = vadd.f32 %v397_v17, %v65_v10 }
  0xef   :  { %507 = vst [vmem:[%s848_s3 + $0x100] sm:$0xff] %v396_v15  ;;  %285 = vst [vmem:[%s848_s3 + $0x48] sm:$0xff] %v232_v16  ;;  %v235_v20 = vpop.f32.mrb[10].mxu0 }
  0xf0   :  { %508 = vst [vmem:[%s848_s3 + $0x108] sm:$0xff] %v398_v18  ;;  %v236_v21 = vadd.f32 %v235_v20, %v70_v19  ;;  %v401_v22 = vpop.f32.mrb[10].mxu1  ;;  %v237_v23 = vpop.f32.mrb[11].mxu0 }
  0xf1   :  { %v402_v24 = vadd.f32 %v401_v22, %v70_v19  ;;  %v238_v25 = vadd.f32 %v237_v23, %v70_v19  ;;  %v403_v26 = vpop.f32.mrb[11].mxu1 }
  0xf2   :  { %286 = vst [vmem:[%s848_s3 + $0x50] sm:$0xff] %v236_v21  ;;  %v404_v27 = vadd.f32 %v403_v26, %v70_v19 }
  0xf3   :  { %509 = vst [vmem:[%s848_s3 + $0x110] sm:$0xff] %v402_v24  ;;  %287 = vst [vmem:[%s848_s3 + $0x58] sm:$0xff] %v238_v25  ;;  %v241_v29 = vpop.f32.mrb[12].mxu0 }
  0xf4   :  { %510 = vst [vmem:[%s848_s3 + $0x118] sm:$0xff] %v404_v27  ;;  %v242_v30 = vadd.f32 %v241_v29, %v75_v28  ;;  %v407_v31 = vpop.f32.mrb[12].mxu1  ;;  %v243_v32 = vpop.f32.mrb[13].mxu0 }
  0xf5   :  { %v408_v33 = vadd.f32 %v407_v31, %v75_v28  ;;  %v244_v34 = vadd.f32 %v243_v32, %v75_v28  ;;  %v409_v35 = vpop.f32.mrb[13].mxu1 }
  0xf6   :  { %288 = vst [vmem:[%s848_s3 + $0x60] sm:$0xff] %v242_v30  ;;  %v410_v36 = vadd.f32 %v409_v35, %v75_v28 }
  0xf7   :  { %511 = vst [vmem:[%s848_s3 + $0x120] sm:$0xff] %v408_v33  ;;  %289 = vst [vmem:[%s848_s3 + $0x68] sm:$0xff] %v244_v34  ;;  %v247_v38 = vpop.f32.mrb[14].mxu0 }
  0xf8   :  { %512 = vst [vmem:[%s848_s3 + $0x128] sm:$0xff] %v410_v36  ;;  %v248_v39 = vadd.f32 %v247_v38, %v80_v37  ;;  %v413_v40 = vpop.f32.mrb[14].mxu1  ;;  %v249_v41 = vpop.f32.mrb[15].mxu0 }
  0xf9   :  { %v414_v42 = vadd.f32 %v413_v40, %v80_v37  ;;  %v250_v43 = vadd.f32 %v249_v41, %v80_v37  ;;  %v415_v44 = vpop.f32.mrb[15].mxu1 }
  0xfa   :  { %290 = vst [vmem:[%s848_s3 + $0x70] sm:$0xff] %v248_v39  ;;  %v416_v45 = vadd.f32 %v415_v44, %v80_v37 }
  0xfb   :  { %513 = vst [vmem:[%s848_s3 + $0x130] sm:$0xff] %v414_v42  ;;  %291 = vst [vmem:[%s848_s3 + $0x78] sm:$0xff] %v250_v43  ;;  %v253_v47 = vpop.f32.mrb[16].mxu0 }
  0xfc   :  { %514 = vst [vmem:[%s848_s3 + $0x138] sm:$0xff] %v416_v45  ;;  %v254_v48 = vadd.f32 %v253_v47, %v85_v46  ;;  %v419_v49 = vpop.f32.mrb[16].mxu1  ;;  %v255_v50 = vpop.f32.mrb[17].mxu0 }
  0xfd   :  { %v420_v51 = vadd.f32 %v419_v49, %v85_v46  ;;  %v256_v52 = vadd.f32 %v255_v50, %v85_v46  ;;  %v421_v53 = vpop.f32.mrb[17].mxu1 }
  0xfe   :  { %292 = vst [vmem:[%s848_s3 + $0x80] sm:$0xff] %v254_v48  ;;  %v422_v54 = vadd.f32 %v421_v53, %v85_v46 }
  0xff   :  { %515 = vst [vmem:[%s848_s3 + $0x140] sm:$0xff] %v420_v51  ;;  %293 = vst [vmem:[%s848_s3 + $0x88] sm:$0xff] %v256_v52  ;;  %v259_v56 = vpop.f32.mrb[18].mxu0 }
 0x100   :  { %516 = vst [vmem:[%s848_s3 + $0x148] sm:$0xff] %v422_v54  ;;  %v260_v57 = vadd.f32 %v259_v56, %v90_v55  ;;  %v425_v58 = vpop.f32.mrb[18].mxu1  ;;  %v261_v59 = vpop.f32.mrb[19].mxu0 }
 0x101   :  { %v426_v60 = vadd.f32 %v425_v58, %v90_v55  ;;  %v262_v61 = vadd.f32 %v261_v59, %v90_v55  ;;  %v427_v62 = vpop.f32.mrb[19].mxu1 }
 0x102   :  { %294 = vst [vmem:[%s848_s3 + $0x90] sm:$0xff] %v260_v57  ;;  %v428_v63 = vadd.f32 %v427_v62, %v90_v55 }
 0x103   :  { %517 = vst [vmem:[%s848_s3 + $0x150] sm:$0xff] %v426_v60  ;;  %295 = vst [vmem:[%s848_s3 + $0x98] sm:$0xff] %v262_v61  ;;  %v265_v1 = vpop.f32.mrb[20].mxu0 }
 0x104   :  { %518 = vst [vmem:[%s848_s3 + $0x158] sm:$0xff] %v428_v63  ;;  %v266_v2 = vadd.f32 %v265_v1, %v95_v0  ;;  %v431_v3 = vpop.f32.mrb[20].mxu1  ;;  %v267_v4 = vpop.f32.mrb[21].mxu0 }
 0x105   :  { %v432_v5 = vadd.f32 %v431_v3, %v95_v0  ;;  %v268_v6 = vadd.f32 %v267_v4, %v95_v0  ;;  %v433_v7 = vpop.f32.mrb[21].mxu1 }
 0x106   :  { %296 = vst [vmem:[%s848_s3 + $0xa0] sm:$0xff] %v266_v2  ;;  %v434_v8 = vadd.f32 %v433_v7, %v95_v0 }
 0x107   :  { %519 = vst [vmem:[%s848_s3 + $0x160] sm:$0xff] %v432_v5  ;;  %297 = vst [vmem:[%s848_s3 + $0xa8] sm:$0xff] %v268_v6  ;;  %v271_v10 = vpop.f32.mrb[22].mxu0 }
 0x108   :  { %520 = vst [vmem:[%s848_s3 + $0x168] sm:$0xff] %v434_v8  ;;  %v272_v11 = vadd.f32 %v271_v10, %v100_v9  ;;  %v437_v12 = vpop.f32.mrb[22].mxu1  ;;  %v273_v13 = vpop.f32.mrb[23].mxu0 }
 0x109   :  { %v438_v14 = vadd.f32 %v437_v12, %v100_v9  ;;  %v274_v15 = vadd.f32 %v273_v13, %v100_v9  ;;  %v439_v16 = vpop.f32.mrb[23].mxu1 }
 0x10a   :  { %298 = vst [vmem:[%s848_s3 + $0xb0] sm:$0xff] %v272_v11  ;;  %v440_v17 = vadd.f32 %v439_v16, %v100_v9 }
 0x10b   :  { %521 = vst [vmem:[%s848_s3 + $0x170] sm:$0xff] %v438_v14  ;;  %299 = vst [vmem:[%s848_s3 + $0xb8] sm:$0xff] %v274_v15 }
 0x10c   :  { %522 = vst [vmem:[%s848_s3 + $0x178] sm:$0xff] %v440_v17 }

</bundles_post_ra>
